<compile_context>
chip_gen: v7x
topology: tpu7x:2x2x1
jax: 0.10.0
libtpu: 0.0.40
codegen_flags: <defaults>
</compile_context>

<pallas_src>
import math
from functools import partial

import jax
import jax.numpy as jnp
from jax.experimental import pallas as pl
from jax.experimental.pallas import tpu as pltpu


# f32-accumulating matmul helpers (a @ b and a @ b.T) — only standard /
# rhs-transposed contractions (both lower natively to the MXU).
_MM = partial(jax.lax.dot_general,
              dimension_numbers=(((1,), (0,)), ((), ())),
              preferred_element_type=jnp.float32)
_MM_BT = partial(jax.lax.dot_general,
                 dimension_numbers=(((1,), (1,)), ((), ())),
                 preferred_element_type=jnp.float32)


# ----------------------------------------------------------------------------
# Dense (Linear) layer: y = (x @ W + b), bf16 MXU operands, f32 accumulation,
# row-tiled with a fixed tile so DMA/compute pipeline regardless of M.
# ----------------------------------------------------------------------------
def _dense_kernel(x_ref, w_ref, b_ref, o_ref):
    acc = _MM(x_ref[...].astype(jnp.bfloat16), w_ref[...].astype(jnp.bfloat16))
    o_ref[...] = (acc + b_ref[...]).astype(o_ref.dtype)


def dense(x2d, w, b, out_dtype=jnp.bfloat16, block_rows=256):
    M, K = x2d.shape
    K2, N = w.shape
    assert K == K2
    bm = block_rows if M >= block_rows else M      # small M -> single full block
    return pl.pallas_call(
        _dense_kernel,
        out_shape=jax.ShapeDtypeStruct((M, N), out_dtype),
        grid=(pl.cdiv(M, bm),),
        in_specs=[
            pl.BlockSpec((bm, K), lambda i: (i, 0)),
            pl.BlockSpec((K, N), lambda i: (0, 0)),   # resident after first DMA
            pl.BlockSpec((1, N), lambda i: (0, 0)),
        ],
        out_specs=pl.BlockSpec((bm, N), lambda i: (i, 0)),
        compiler_params=pltpu.CompilerParams(dimension_semantics=("parallel",)),
    )(x2d, w, b.reshape(1, N))


# ----------------------------------------------------------------------------
# Per-batch ProbSparse attention kernel (all heads inside one grid step) with the
# output projection fused into the epilogue.  Output block is lane-dense (Lv, E).
# ----------------------------------------------------------------------------
def prob_attention_batched(q, k, v, cnt, tri, w_o, b_o, scale, top_num, n_heads):
    B, Lq, HD = q.shape
    _, Lk, _ = k.shape
    _, Lv, HDv = v.shape
    H = n_heads
    d = HD // H
    dv = HDv // H
    E_out = w_o.shape[1]
    assert HD == H * d and HDv == H * dv
    assert Lk == Lv, "attention requires key length == value length"
    assert Lq == Lv, "scatter of attended rows requires q length == value length"
    assert 1 <= top_num <= Lq
    top_pad = max(8, ((top_num + 7) // 8) * 8)     # pad selection to sublane multiple

    # TODO(synk): for long sequences (v7x 64 MiB VMEM) chunk Lk with a two-pass
    # flash-style scheme (pass 1: streaming masked max / sum(C*s) for disc; pass 2:
    # online softmax for the selected queries) and replace the (Lv,Lv) tri matmul
    # with a chunked block-triangular prefix sum.

    def kernel(q_ref, k_ref, v_ref, c_ref, tri_ref, wo_ref, bo_ref, o_ref):
        C = c_ref[...].astype(jnp.float32)          # (Lq, Lk) sample counts (exact)
        sampled = C > 0.0
        neg = jnp.float32(-1e30)
        inv_lq = jnp.float32(1.0 / Lq)
        scale_f = jnp.float32(scale)
        top_f = jnp.float32(top_num)

        # hoisted constants (JAX does not CSE broadcast_in_dim inside the head loop)
        row_i = jax.lax.broadcasted_iota(jnp.float32, (Lq, Lq), 0)
        col_i = jax.lax.broadcasted_iota(jnp.float32, (Lq, Lq), 1)
        diag = row_i == col_i
        tie_lower = col_i < row_i
        t_row = jax.lax.broadcasted_iota(jnp.float32, (top_pad, Lq), 0)  # gather P
        t_col = jax.lax.broadcasted_iota(jnp.float32, (Lq, top_pad), 1)  # scatter P^T

        # cumsum-of-V fallback for ALL heads at once: one wide bf16 MXU matmul.
        vcum_all = _MM(tri_ref[...], v_ref[...])    # (Lv, H*dv) f32

        acc = jnp.zeros((Lv, E_out), jnp.float32)   # fused W_o accumulator

        for h in range(H):                          # static unroll over heads
            qh = q_ref[:, h * d:(h + 1) * d]        # (Lq, d)  bf16
            kh = k_ref[:, h * d:(h + 1) * d]        # (Lk, d)  bf16
            vh = v_ref[:, h * dv:(h + 1) * dv]      # (Lv, dv) bf16

            # QK^T (bf16 operands, f32 acc) used for the ProbSparse measure only.
            s = _MM_BT(qh, kh)                                            # (Lq, Lk)
            max_s = jnp.max(jnp.where(sampled, s, neg), axis=-1, keepdims=True)
            sum_s = jnp.sum(C * s, axis=-1, keepdims=True)
            disc = max_s - sum_s * inv_lq                                 # (Lq, 1)

            # Relocate disc to lanes (masked max: a (Lq,1)->(1,Lq) XLU transpose is
            # not reliably lowerable, so keep the mask trick), then rank all queries
            # with a single all-pairs compare.  Tie-break = lower index first, which
            # matches lax.top_k / torch.topk.
            disc_row = jnp.max(jnp.where(diag, disc, neg), axis=0, keepdims=True)
            beats = (disc_row > disc) | ((disc_row == disc) & tie_lower)  # j beats i
            beats_f = beats.astype(jnp.float32)
            rank = jnp.sum(beats_f, axis=-1, keepdims=True)               # (Lq, 1)
            # total order => lane-oriented rank comes from the column sums for free
            rank_row = jnp.float32(Lq - 1) - jnp.sum(beats_f, axis=0, keepdims=True)
            sel = rank < top_f                                            # (Lq, 1)

            # Exact 0/1 selection matrices: P gathers selected queries, PT scatters.
            P = ((t_row == rank_row) & (t_row < top_f)).astype(jnp.bfloat16)
            PT = ((t_col == rank) & (t_col < top_f)).astype(jnp.float32)

            # softmax @ V for the selected queries only (the ProbSparse saving).
            q_sel = _MM(P, qh).astype(jnp.bfloat16)        # (top_pad, d) exact gather
            sc = _MM_BT(q_sel, kh) * scale_f               # (top_pad, Lk)
            sc = sc - jnp.max(sc, axis=-1, keepdims=True)
            p = jnp.exp(sc)
            p = p / jnp.sum(p, axis=-1, keepdims=True)     # exact normalization
            attn_sel = _MM(p.astype(jnp.bfloat16), vh)     # (top_pad, dv)
            attn_full = _MM(PT, attn_sel)                  # (Lq, dv) exact scatter

            blend = jnp.where(sel, attn_full, vcum_all[:, h * dv:(h + 1) * dv])

            # fused output projection: accumulate this head's slice of W_o.
            acc = acc + _MM(blend.astype(jnp.bfloat16), wo_ref[h * dv:(h + 1) * dv, :])

        o_ref[...] = acc + bo_ref[...]                     # lane-dense (Lv, E) store

    return pl.pallas_call(
        kernel,
        out_shape=jax.ShapeDtypeStruct((B, Lv, E_out), jnp.float32),
        grid=(B,),
        in_specs=[
            pl.BlockSpec((None, Lq, HD), lambda b: (b, 0, 0)),
            pl.BlockSpec((None, Lk, HD), lambda b: (b, 0, 0)),
            pl.BlockSpec((None, Lv, HDv), lambda b: (b, 0, 0)),
            pl.BlockSpec((Lq, Lk), lambda b: (0, 0)),      # cnt: constant, resident
            pl.BlockSpec((Lv, Lv), lambda b: (0, 0)),      # tri: constant, resident
            pl.BlockSpec((HDv, E_out), lambda b: (0, 0)),  # W_o: resident
            pl.BlockSpec((1, E_out), lambda b: (0, 0)),    # b_o: resident
        ],
        out_specs=pl.BlockSpec((None, Lv, E_out), lambda b: (b, 0, 0)),
        compiler_params=pltpu.CompilerParams(
            dimension_semantics=("parallel",),
            vmem_limit_bytes=64 * 1024 * 1024),
    )(q, k, v, cnt, tri, w_o, b_o)


# ----------------------------------------------------------------------------
# Full module forward (no head-split transposes: activations stay (B, L, H*dh)).
# ----------------------------------------------------------------------------
def probability_attention(params, queries, keys, values, rand_index,
                          n_heads, factor, scale):
    B, Lq, E = queries.shape
    _, Lk, _ = keys.shape
    _, Lv, _ = values.shape
    H = n_heads
    kq_dim = params["w_q"].shape[1] // H
    v_dim = params["w_v"].shape[1] // H

    q2 = dense(queries.reshape(B * Lq, E), params["w_q"], params["b_q"]).reshape(B, Lq, H * kq_dim)
    k2 = dense(keys.reshape(B * Lk, E), params["w_k"], params["b_k"]).reshape(B, Lk, H * kq_dim)
    v2 = dense(values.reshape(B * Lv, E), params["w_v"], params["b_v"]).reshape(B, Lv, H * v_dim)

    top_num = factor * int(math.log(Lq))
    top_num = top_num if top_num < Lq else Lq

    # cnt[i, j] = #times key j was sampled for query i (small ints -> exact in bf16)
    cnt = jax.nn.one_hot(rand_index, Lk, dtype=jnp.float32).sum(axis=1).astype(jnp.bfloat16)
    tri = jnp.tril(jnp.ones((Lv, Lv), jnp.bfloat16))

    w_o = params["w_o"].astype(jnp.bfloat16)
    b_o = params["b_o"].reshape(1, -1).astype(jnp.float32)

    return prob_attention_batched(q2, k2, v2, cnt, tri, w_o, b_o, scale, top_num, H)


# ----------------------------------------------------------------------------
# Pure-JAX reference (same math, same bf16 quantization points) for a check.
# ----------------------------------------------------------------------------
def reference(params, queries, keys, values, rand_index, n_heads, factor, scale):
    f32, bf16 = jnp.float32, jnp.bfloat16
    B, Lq, E = queries.shape
    _, Lk, _ = keys.shape
    _, Lv, _ = values.shape
    H = n_heads
    d = params["w_q"].shape[1] // H
    dv = params["w_v"].shape[1] // H

    def lin_bf16(x, w, b):
        y = jnp.dot(x.astype(bf16), w.astype(bf16), preferred_element_type=f32) + b
        return y.astype(bf16)

    qv = lin_bf16(queries, params["w_q"], params["b_q"]).reshape(B, Lq, H, d).transpose(0, 2, 1, 3)
    kv = lin_bf16(keys, params["w_k"], params["b_k"]).reshape(B, Lk, H, d).transpose(0, 2, 1, 3)
    vv = lin_bf16(values, params["w_v"], params["b_v"]).reshape(B, Lv, H, dv).transpose(0, 2, 1, 3)

    top_num = factor * int(math.log(Lq))
    top_num = top_num if top_num < Lq else Lq
    cnt = jax.nn.one_hot(rand_index, Lk, dtype=f32).sum(axis=1)

    S = jnp.einsum("bhqd,bhkd->bhqk", qv, kv, preferred_element_type=f32)
    max_s = jnp.max(jnp.where(cnt > 0, S, -1e30), axis=-1)
    sum_s = jnp.sum(cnt * S, axis=-1)
    disc = max_s - sum_s * (1.0 / Lq)
    top_idx = jax.lax.top_k(disc, top_num)[1]
    q_imp = jnp.take_along_axis(qv, top_idx[..., None], axis=2)
    scores = jnp.einsum("bhtd,bhkd->bhtk", q_imp, kv, preferred_element_type=f32) * scale
    scores = scores - jnp.max(scores, axis=-1, keepdims=True)
    p = jnp.exp(scores)
    p = p / jnp.sum(p, axis=-1, keepdims=True)
    attn = jnp.einsum("bhtk,bhkd->bhtd", p.astype(bf16), vv, preferred_element_type=f32)
    vcum = jnp.cumsum(vv.astype(f32), axis=2)
    bidx = jnp.arange(B)[:, None, None]
    hidx = jnp.arange(H)[None, :, None]
    vcum = vcum.at[bidx, hidx, top_idx].set(attn)
    merged = vcum.transpose(0, 2, 1, 3).reshape(B, Lv, H * dv)
    out = jnp.dot(merged.astype(bf16), params["w_o"].astype(bf16),
                  preferred_element_type=f32) + params["b_o"]
    return out


if __name__ == "__main__":
    B, L, E, H = 2, 16, 32, 2
    factor = 5
    kq_dim = E // H
    v_dim = E // H
    scale = 1.0 / math.sqrt(kq_dim)

    key = jax.random.PRNGKey(0)
    ks = jax.random.split(key, 12)

    def init(k, shape):
        return 0.1 * jax.random.normal(k, shape, jnp.float32)

    params = {
        "w_q": init(ks[0], (E, kq_dim * H)), "b_q": init(ks[1], (kq_dim * H,)),
        "w_k": init(ks[2], (E, kq_dim * H)), "b_k": init(ks[3], (kq_dim * H,)),
        "w_v": init(ks[4], (E, v_dim * H)),  "b_v": init(ks[5], (v_dim * H,)),
        "w_o": init(ks[6], (v_dim * H, E)),  "b_o": init(ks[7], (E,)),
    }
    queries = jax.random.normal(ks[8], (B, L, E), jnp.float32)
    keys_in = jax.random.normal(ks[9], (B, L, E), jnp.float32)
    values = jax.random.normal(ks[10], (B, L, E), jnp.float32)

    # rand_index plays the role of torch.randint in __probability_matrix__
    # (deterministic here; randomness is part of the algorithm, not the weights).
    rand_num = factor * int(math.ceil(math.log(L)))
    rand_num = min(rand_num, L)
    rand_index = jax.random.randint(ks[11], (L, rand_num), 0, L)

    out = probability_attention(params, queries, keys_in, values, rand_index,
                                H, factor, scale)
    out = jax.block_until_ready(out)

    ref = reference(params, queries, keys_in, values, rand_index, H, factor, scale)

    assert out.shape == (B, L, E)
    assert bool(jnp.isfinite(out).all())
    max_err = float(jnp.max(jnp.abs(out - ref)))
    assert bool(jnp.allclose(out, ref, atol=5e-3, rtol=5e-3)), f"max err {max_err}"
    print("KERNEL_OK")
</pallas_src>

<mosaic_0001>
module attributes {stable_mosaic.version = 11 : i64} {
  func.func @_dense_kernel(%arg0: i32, %arg1: memref<32x32xf32, #tpu.memory_space<vmem>>, %arg2: memref<32x32xf32, #tpu.memory_space<vmem>>, %arg3: memref<1x32xf32, #tpu.memory_space<vmem>>, %arg4: memref<32x32xbf16, #tpu.memory_space<vmem>>) attributes {dimension_semantics = [#tpu.dimension_semantics<parallel>], iteration_bounds = array<i64: 1>, scalar_prefetch = 0 : i64, scratch_operands = 0 : i64, tpu.core_type = #tpu.core_type<tc>, window_params = [{transform_indices = @transform_0, window_bounds = array<i64: 32, 32>}, {pipeline_mode = #tpu.pipeline_mode<synchronous>, transform_indices = @transform_1, window_bounds = array<i64: 32, 32>}, {pipeline_mode = #tpu.pipeline_mode<synchronous>, transform_indices = @transform_2, window_bounds = array<i64: 1, 32>}, {transform_indices = @transform_3, window_bounds = array<i64: 32, 32>}]} {
    %c0 = arith.constant 0 : index
    %c0_0 = arith.constant 0 : index
    %0 = vector.load %arg1[%c0, %c0_0] : memref<32x32xf32, #tpu.memory_space<vmem>>, vector<32x32xf32>
    %1 = arith.truncf %0 : vector<32x32xf32> to vector<32x32xbf16>
    %c0_1 = arith.constant 0 : index
    %c0_2 = arith.constant 0 : index
    %2 = vector.load %arg2[%c0_1, %c0_2] : memref<32x32xf32, #tpu.memory_space<vmem>>, vector<32x32xf32>
    %3 = arith.truncf %2 : vector<32x32xf32> to vector<32x32xbf16>
    %cst = arith.constant dense<0.000000e+00> : vector<32x32xf32>
    %4 = tpu.matmul %1, %3, %cst {dimension_numbers = #tpu.dot_dimension_numbers<[1], [0], [0], [1], [0, 0, 1, 1], [], []>} : vector<32x32xbf16>, vector<32x32xbf16>, vector<32x32xf32> -> vector<32x32xf32>
    %c0_3 = arith.constant 0 : index
    %c0_4 = arith.constant 0 : index
    %5 = vector.load %arg3[%c0_3, %c0_4] : memref<1x32xf32, #tpu.memory_space<vmem>>, vector<1x32xf32>
    %6 = vector.broadcast %5 : vector<1x32xf32> to vector<32x32xf32>
    %7 = arith.addf %4, %6 : vector<32x32xf32>
    %8 = arith.truncf %7 : vector<32x32xf32> to vector<32x32xbf16>
    %c0_5 = arith.constant 0 : index
    %c0_6 = arith.constant 0 : index
    %9 = vector.load %arg4[%c0_5, %c0_6] : memref<32x32xbf16, #tpu.memory_space<vmem>>, vector<32x32xbf16>
    tpu.vector_store %arg4[%c0_5, %c0_6], %8 {strides = array<i32>} : memref<32x32xbf16, #tpu.memory_space<vmem>>, vector<32x32xbf16>,
    return
  }
  func.func @transform_0(%arg0: i32) -> (i32, i32) {
    %c0_i32 = arith.constant 0 : i32
    %c0_i32_0 = arith.constant 0 : i32
    return %arg0, %c0_i32 : i32, i32
  }
  func.func @transform_1(%arg0: i32) -> (i32, i32) {
    %c0_i32 = arith.constant 0 : i32
    %c0_i32_0 = arith.constant 0 : i32
    %c0_i32_1 = arith.constant 0 : i32
    return %c0_i32, %c0_i32_0 : i32, i32
  }
  func.func @transform_2(%arg0: i32) -> (i32, i32) {
    %c0_i32 = arith.constant 0 : i32
    %c0_i32_0 = arith.constant 0 : i32
    %c0_i32_1 = arith.constant 0 : i32
    return %c0_i32, %c0_i32_0 : i32, i32
  }
  func.func @transform_3(%arg0: i32) -> (i32, i32) {
    %c0_i32 = arith.constant 0 : i32
    %c0_i32_0 = arith.constant 0 : i32
    return %arg0, %c0_i32 : i32, i32
  }
}

</mosaic_0001>

<bundles_post_ra>
// kernel: tpu_custom_call.1
= control target key start
LH: loop header
LB: loop body
LE: loop exit
PB: predicated region body
PF: predicated region fallthrough
CT: control target
= control target key end

     0   :  { %8 = vsyncpa [#allocation3], 0  ;;  %s330_s0 = inlined_call_operand.hbm [shape: f32[32,32], index: 0, kind: input, shape index: {}]   ;;  %s331_s1 = inlined_call_operand.hbm [shape: f32[32,32], index: 1, kind: input, shape index: {}]   ;;  %s332_s2 = inlined_call_operand.vmem [shape: f32[1,32], index: 2, kind: input, shape index: {}]   ;;  %s333_s3 = inlined_call_operand.hbm [shape: bf16[32,32], index: 3, kind: output, shape index: {}]  }
   0x1   :  { %9 = vsyncpa [#allocation6], 0 }
   0x2   :  { %10 = vsyncpa [#allocation4], 0  ;;  %s260_s12 = smov [#allocation2]   ;;  %s188_s16 = scalar_lea.hbm %s330_s0, 512 }
   0x3   :  { %s16_s13 = sshll.u32 %s260_s12, 4  ;;  %p189_p0 = scmp.ne.s32.totalorder %s330_s0, %s188_s16  ;;  %s17_s13 = int_to_ptr.vmem [resolvable:$true] %s16_s13 }
   0x4   :  { %p192_p1 = scmp.lt.u32.totalorder %s188_s16, %s330_s0 }
   0x6   :  { %p194_p2 = pnand %p192_p1, %p189_p0 }
   0x8   :  { %197 = shalt.err (!%p194_p2)
}
   0x9   :  { %s198_s21 = scalar_lea.vmem %s17_s13, 512  ;;  %p203_p4 = scmp.lt.s32.totalorder %s17_s13, %s17_s13 }
   0xa   :  { %p199_p3 = scmp.ne.s32.totalorder %s17_s13, %s198_s21  ;;  %p204_p5 = scmp.lt.s32.totalorder %s198_s21, %s198_s21 }
   0xc   :  { %p205_p6 = por %p204_p5, %p203_p4 }
   0xe   :  { %p206_p7 = pnand %p205_p6, %p199_p3 }
  0x10   :  { %209 = shalt.err (!%p206_p7)
}
  0x11   :  { %s261_s22 = smov 128   ;;  %s262_s23 = smov 8  }
  0x12   :  { %22 = dma.hbm_to_vmem [thread:$0]  %s330_s0, 512, %s17_s13, [#allocation3], %s261_s22, %s261_s22, %s262_s23  }
  0x13   :  { %s263_s26 = smov [#allocation5]   ;;  %s210_s30 = scalar_lea.hbm %s331_s1, 512 }
  0x14   :  { %s28_s27 = sshll.u32 %s263_s26, 4  ;;  %p211_p8 = scmp.ne.s32.totalorder %s331_s1, %s210_s30  ;;  %s29_s27 = int_to_ptr.vmem [resolvable:$true] %s28_s27 }
  0x15   :  { %p214_p9 = scmp.lt.u32.totalorder %s210_s30, %s331_s1 }
  0x17   :  { %p216_p10 = pnand %p214_p9, %p211_p8 }
  0x19   :  { %219 = shalt.err (!%p216_p10)
}
  0x1a   :  { %s220_s8 = scalar_lea.vmem %s29_s27, 512  ;;  %p225_p12 = scmp.lt.s32.totalorder %s29_s27, %s29_s27 }
  0x1b   :  { %p221_p11 = scmp.ne.s32.totalorder %s29_s27, %s220_s8  ;;  %p226_p13 = scmp.lt.s32.totalorder %s220_s8, %s220_s8 }
  0x1d   :  { %p227_p0 = por %p226_p13, %p225_p12 }
  0x1f   :  { %p228_p1 = pnand %p227_p0, %p221_p11 }
  0x21   :  { %231 = shalt.err (!%p228_p1)
}
  0x22   :  { %34 = dma.hbm_to_vmem [thread:$0]  %s331_s1, 512, %s29_s27, [#allocation6], %s261_s22, %s261_s22, %s262_s23  }
  0x23   :  { %254 = dma.done.wait [#allocation3], 512  }
  0x24   :  { %255 = vsyncadd [#allocation3], 4294966784 }
  0x25   :  { %256 = dma.done.wait [#allocation6], 512  }
  0x26   :  { %257 = vsyncadd [#allocation6], 4294966784  ;;  %v50_v0 = vld [vmem:[#allocation5] sm:$0xff]  ;;  %v51_v1 = vld [vmem:[#allocation5 + $0x8] sm:$0xff]  ;;  %vm63_vm0 = vcmask 261120   ;;  %vm135_vm1 = vcmask 257024  }
  0x27   :  { %v52_v2 = vld [vmem:[#allocation5 + $0x10] sm:$0xff]  ;;  %v54_v3 = vpack.c.bf16 %v51_v1, %v50_v0  ;;  %v53_v4 = vld [vmem:[#allocation5 + $0x18] sm:$0xff]  ;;  %v44_v5 = vld [vmem:[#allocation2] sm:$0xff]  ;;  %s264_s11 = smov [#allocation7]  }
  0x28   :  { %v45_v6 = vld [vmem:[#allocation2 + $0x8] sm:$0xff]  ;;  %v55_v7 = vpack.c.bf16 %v53_v4, %v52_v2  ;;  %v46_v9 = vld [vmem:[#allocation2 + $0x10] sm:$0xff]  ;;  %v47_v10 = vld [vmem:[#allocation2 + $0x18] sm:$0xff]  ;;  %s145_s12 = sshll.u32 %s264_s11, 4  ;;  %s146_s12 = int_to_ptr.vmem [resolvable:$true] %s145_s12 }
  0x29   :  { %v48_v8 = vpack.c.bf16 %v45_v6, %v44_v5  ;;  %173 = vmatprep.subr.bf16.mxu0 %v54_v3  ;;  %v49_v11 = vpack.c.bf16 %v47_v10, %v46_v9  ;;  %v158_v12 = vld [vmem:[%s332_s2] ss:$0 sm:$0xff]  ;;  %s232_s2 = scalar_lea.vmem %s146_s12, 256  ;;  %p237_p3 = scmp.lt.s32.totalorder %s146_s12, %s146_s12 }
  0x2a   :  { %174 = vmatpush3.bf16.msra.mxu0 %v54_v3  ;;  %p233_p2 = scmp.ne.s32.totalorder %s146_s12, %s232_s2  ;;  %p238_p4 = scmp.lt.s32.totalorder %s232_s2, %s232_s2 }
  0x2b   :  { %177 = vmatprep.mubr.msk.bf16.mxu0 %vm63_vm0, %v48_v8  ;;  %175 = vmatprep.subr.bf16.mxu0 %v55_v7 }
  0x2c   :  { %p239_p5 = por %p238_p4, %p237_p3 }
  0x2e   :  { %176 = vmatpush3.bf16.msra.mxu0 %v55_v7  ;;  %p240_p6 = pnand %p239_p5, %p233_p2 }
  0x31   :  { %178 = vmatmul.mubr.msk.bf16.vlgmr.msra.gmra.mrb[0].mxu0 %vm63_vm0, %v49_v11 }
 0x104   :  { %v179_v13 = vpop.f32.mrb[0].mxu0 }
 0x105   :  { %v113_v14 = vadd.f32 %v179_v13, %v158_v12  ;;  %v104_v15 = vpop.f32.mrb[1].mxu0 }
 0x106   :  { %v105_v16 = vadd.f32 %v158_v12, %v104_v15  ;;  %v180_v17 = vpop.f32.mrb[2].mxu0 }
 0x107   :  { %v167_v18 = vpack.c.bf16 %v113_v14, %v113_v14  ;;  %v116_v19 = vadd.f32 %v180_v17, %v158_v12  ;;  %v107_v20 = vpop.f32.mrb[3].mxu0 }
 0x108   :  { %v165_v21 = vpack.c.bf16 %v105_v16, %v105_v16  ;;  %v108_v22 = vadd.f32 %v158_v12, %v107_v20 }
 0x109   :  { %138 = vst.msk [vmem:[#allocation7 + $0x8] sm:$0xf] %vm135_vm1, %v167_v18  ;;  %v168_v23 = vpack.c.bf16 %v116_v19, %v116_v19 }
 0x10a   :  { %136 = vst.msk [vmem:[#allocation7] sm:$0xf] %vm135_vm1, %v165_v21  ;;  %v166_v24 = vpack.c.bf16 %v108_v22, %v108_v22 }
 0x10b   :  { %139 = vst.msk [vmem:[#allocation7 + $0xc] sm:$0xf] %vm135_vm1, %v168_v23 }
 0x10c   :  { %137 = vst.msk [vmem:[#allocation7 + $0x4] sm:$0xf] %vm135_vm1, %v166_v24 }
 0x10d   :  { %243 = shalt.err (!%p240_p6)
}
 0x10e   :  { %s244_s15 = scalar_lea.hbm %s333_s3, 256 }
 0x10f   :  { %p245_p7 = scmp.ne.s32.totalorder %s333_s3, %s244_s15  ;;  %p248_p8 = scmp.lt.u32.totalorder %s244_s15, %s333_s3 }
 0x111   :  { %p250_p9 = pnand %p248_p8, %p245_p7 }
 0x113   :  { %253 = shalt.err (!%p250_p9)
}
 0x114   :  { %s265_s20 = smov 64   ;;  %s266_s21 = smov 4  }
 0x115   :  { %151 = dma.vmem_to_hbm [thread:$0]  %s146_s12, 256, %s333_s3, [#allocation4], %s265_s20, %s265_s20, %s266_s21  }
 0x116   :  { %258 = dma.done.wait [#allocation4], 256  }
 0x117   :  { %259 = vsyncadd [#allocation4], 4294967040 }
 0x118   :  { %155 = vsyncpa [#allocation3], 1 }
 0x119   :  { %156 = vsyncpa [#allocation6], 1 }
 0x11a   :  { %157 = vsyncpa [#allocation4], 1 }

</bundles_post_ra>
